<compile_context>
chip_gen: v5e
topology: v5e:2x2
jax: 0.10.0
libtpu: 0.0.40
codegen_flags: <defaults>
</compile_context>

<pallas_src>
import functools

import jax
import jax.numpy as jnp
from jax import lax
from jax.experimental import pallas as pl
from jax.experimental.pallas import tpu as pltpu


def _round_up(x: int, m: int) -> int:
    return (x + m - 1) // m * m


def _device_kind() -> str:
    try:
        return jax.devices()[0].device_kind.lower()
    except Exception:  # pragma: no cover - defensive
        return ""


def lnncell_kernel(xh_ref, h_ref, wf_ref, inv_tau_ref, out_ref, *, precision):
    # One fused MXU matmul: [x | h] @ [[W],[U]]   (f32 accumulate).
    pre = jnp.dot(
        xh_ref[...], wf_ref[...],
        preferred_element_type=jnp.float32, precision=precision)
    h = h_ref[...]
    # h' = h + (tanh(pre) - h) * (1/tau)   -- tanh on the EUP, 2 VPU ops.
    out_ref[...] = (h + (jnp.tanh(pre) - h) * inv_tau_ref[...]).astype(out_ref.dtype)


def prepare_lnncell_params(W, U, tau, *, compute_dtype=jnp.bfloat16, tile_n=None):
    """Build the (static-per-cell) padded fused weight ONCE.

    Returns a dict consumed by `lnncell_forward_prepared`.  In a recurrent
    loop call this once outside the time loop.
    """
    I, H = W.shape
    assert U.shape == (H, H) and tau.shape == (H,)

    kind = _device_kind()
    is_v5e = ("v5e" in kind) or ("v5 lite" in kind) or ("v5litepod" in kind)
    is_v7 = "v7" in kind

    H128 = _round_up(H, 128)
    if tile_n is None:
        tile_n = 256 if is_v5e else 512
    tile_n = min(_round_up(tile_n, 128), H128)
    if is_v7 and H128 >= 256:
        # 2 TensorCores per chip: guarantee >=2 blocks along the hidden axis.
        tile_n = min(tile_n, 128 * max(1, (H128 // 128) // 2))
    H_pad = _round_up(H128, tile_n)

    K = I + H_pad
    K_pad = _round_up(K, 128)

    f32 = jnp.float32
    # Fused weight [[W],[U]] built directly in compute_dtype (no f32 temp).
    Wf = jnp.zeros((K_pad, H_pad), compute_dtype)
    Wf = Wf.at[:I, :H].set(W.astype(compute_dtype))
    Wf = Wf.at[I:I + H, :H].set(U.astype(compute_dtype))

    # Precomputed 1/tau; padded lanes use tau=1 (harmless, sliced off anyway).
    inv_tau = jnp.ones((1, H_pad), f32).at[0, :H].set(1.0 / tau.astype(f32))

    return dict(Wf=Wf, inv_tau=inv_tau, I=I, H=H, H_pad=H_pad, K_pad=K_pad,
                tile_n=tile_n, compute_dtype=jnp.dtype(compute_dtype),
                is_v5e=is_v5e, is_v7=is_v7)


def lnncell_forward_prepared(x, h, params, *, tile_b=None, out_dtype=jnp.float32):
    """One LNNCell step with pre-built params.  x:(B,I), h:(B,H) -> (B,H)."""
    B, I = x.shape
    H = params["H"]
    assert I == params["I"] and h.shape == (B, H)

    compute_dtype = params["compute_dtype"]
    H_pad, K_pad, tile_n = params["H_pad"], params["K_pad"], params["tile_n"]
    f32 = jnp.float32

    if tile_b is None:
        tile_b = 128 if params["is_v5e"] else 256
    tile_b = _round_up(tile_b, 8)
    B8 = _round_up(B, 8)
    tile_b = min(tile_b, B8)
    B_pad = _round_up(B8, tile_b)

    # Fused input [x | h] built directly in compute_dtype (no f32 staging pass).
    xh = jnp.zeros((B_pad, K_pad), compute_dtype)
    xh = xh.at[:B, :I].set(x.astype(compute_dtype))
    xh = xh.at[:B, I:I + H].set(h.astype(compute_dtype))

    # Residual h stream kept in f32 (exact h*(1 - 1/tau) term; tiny vs weights).
    h_pad = jnp.zeros((B_pad, H_pad), f32).at[:B, :H].set(h.astype(f32))

    precision = (lax.Precision.HIGHEST
                 if compute_dtype == jnp.dtype(jnp.float32) else None)
    kernel = functools.partial(lnncell_kernel, precision=precision)

    # Hidden axis OUTER, batch axis INNER: Wf / inv_tau block indices are
    # constant across the inner axis -> weight slab stays VMEM-resident.
    grid = (H_pad // tile_n, B_pad // tile_b)

    vmem_limit = (48 << 20) if params["is_v7"] else (64 << 20)

    out = pl.pallas_call(
        kernel,
        out_shape=jax.ShapeDtypeStruct((B_pad, H_pad), out_dtype),
        grid_spec=pltpu.PrefetchScalarGridSpec(
            num_scalar_prefetch=0,
            grid=grid,
            in_specs=[
                pl.BlockSpec((tile_b, K_pad), lambda n, b: (b, 0)),    # [x|h]
                pl.BlockSpec((tile_b, tile_n), lambda n, b: (b, n)),   # h (f32)
                pl.BlockSpec((K_pad, tile_n), lambda n, b: (0, n)),    # [[W],[U]]
                pl.BlockSpec((1, tile_n), lambda n, b: (0, n)),        # 1/tau
            ],
            out_specs=pl.BlockSpec((tile_b, tile_n), lambda n, b: (b, n)),
        ),
        compiler_params=pltpu.CompilerParams(
            dimension_semantics=("parallel", "parallel"),
            vmem_limit_bytes=vmem_limit,
        ),
    )(xh, h_pad, params["Wf"], params["inv_tau"])

    return out[:B, :H]


def lnncell_forward(x, h, W, U, tau, *, compute_dtype=jnp.bfloat16,
                    tile_b=None, tile_n=None):
    """Convenience one-shot wrapper (prepares weights then runs one step)."""
    params = prepare_lnncell_params(W, U, tau, compute_dtype=compute_dtype,
                                    tile_n=tile_n)
    return lnncell_forward_prepared(x, h, params, tile_b=tile_b)


if __name__ == "__main__":
    def run_case(batch, input_size, hidden_size, ks):
        k_x, k_h, k_w, k_u, k_t = jax.random.split(ks, 5)
        W = 0.1 * jax.random.normal(k_w, (input_size, hidden_size), dtype=jnp.float32)
        U = 0.1 * jax.random.normal(k_u, (hidden_size, hidden_size), dtype=jnp.float32)
        # Module init is ones; use a nontrivial positive tau to exercise the math.
        tau = 0.5 + jax.random.uniform(k_t, (hidden_size,), dtype=jnp.float32)
        x = jax.random.normal(k_x, (batch, input_size), dtype=jnp.float32)
        h = jax.random.normal(k_h, (batch, hidden_size), dtype=jnp.float32)

        hi = jax.lax.Precision.HIGHEST
        # Reference 1: exact module semantics in f32.
        pre_f32 = jnp.dot(x, W, precision=hi) + jnp.dot(h, U, precision=hi)
        ref_f32 = h + (jnp.tanh(pre_f32) - h) / tau[None, :]
        # Reference 2: bf16-rounded operands, f32 accumulate (kernel numerics).
        rnd = lambda a: a.astype(jnp.bfloat16).astype(jnp.float32)
        pre_bf = (jnp.dot(rnd(x), rnd(W), precision=hi)
                  + jnp.dot(rnd(h), rnd(U), precision=hi))
        inv = 1.0 / tau[None, :]
        ref_bf = h + (jnp.tanh(pre_bf) - h) * inv

        # Default (bf16 MXU) path, with hoisted weight prep.
        params = prepare_lnncell_params(W, U, tau)
        out_bf = jax.block_until_ready(lnncell_forward_prepared(x, h, params))
        assert out_bf.shape == (batch, hidden_size)
        assert jnp.allclose(out_bf, ref_bf, atol=1e-4, rtol=1e-4), \
            "mismatch vs bf16-emulated reference"
        assert jnp.allclose(out_bf, ref_f32, atol=5e-2, rtol=5e-2), \
            "bf16 path too far from f32 semantics"

        # Full-f32 path (exact module semantics, Precision.HIGHEST matmul).
        out_f32 = jax.block_until_ready(
            lnncell_forward(x, h, W, U, tau, compute_dtype=jnp.float32))
        assert jnp.allclose(out_f32, ref_f32, atol=1e-4, rtol=1e-4), \
            "mismatch vs f32 reference"

    key = jax.random.PRNGKey(0)
    k1, k2 = jax.random.split(key)
    run_case(8, 16, 32, k1)    # the module's natural small shapes
    run_case(5, 10, 40, k2)    # ragged shapes: exercises the padding path

    print("KERNEL_OK")
</pallas_src>

<mosaic_0001>
module attributes {stable_mosaic.version = 11 : i64} {
  func.func @lnncell_kernel(%arg0: i32, %arg1: i32, %arg2: memref<8x256xbf16, #tpu.memory_space<vmem>>, %arg3: memref<8x128xf32, #tpu.memory_space<vmem>>, %arg4: memref<256x128xbf16, #tpu.memory_space<vmem>>, %arg5: memref<1x128xf32, #tpu.memory_space<vmem>>, %arg6: memref<8x128xf32, #tpu.memory_space<vmem>>) attributes {dimension_semantics = [#tpu.dimension_semantics<parallel>, #tpu.dimension_semantics<parallel>], iteration_bounds = array<i64: 1, 1>, scalar_prefetch = 0 : i64, scratch_operands = 0 : i64, tpu.core_type = #tpu.core_type<tc>, window_params = [{transform_indices = @transform_0, window_bounds = array<i64: 8, 256>}, {transform_indices = @transform_1, window_bounds = array<i64: 8, 128>}, {transform_indices = @transform_2, window_bounds = array<i64: 256, 128>}, {transform_indices = @transform_3, window_bounds = array<i64: 1, 128>}, {transform_indices = @transform_4, window_bounds = array<i64: 8, 128>}]} {
    %c0 = arith.constant 0 : index
    %c0_0 = arith.constant 0 : index
    %0 = vector.load %arg2[%c0, %c0_0] : memref<8x256xbf16, #tpu.memory_space<vmem>>, vector<8x256xbf16>
    %c0_1 = arith.constant 0 : index
    %c0_2 = arith.constant 0 : index
    %1 = vector.load %arg4[%c0_1, %c0_2] : memref<256x128xbf16, #tpu.memory_space<vmem>>, vector<256x128xbf16>
    %cst = arith.constant dense<0.000000e+00> : vector<8x128xf32>
    %2 = tpu.matmul %0, %1, %cst {dimension_numbers = #tpu.dot_dimension_numbers<[1], [0], [0], [1], [0, 0, 1, 1], [], []>} : vector<8x256xbf16>, vector<256x128xbf16>, vector<8x128xf32> -> vector<8x128xf32>
    %c0_3 = arith.constant 0 : index
    %c0_4 = arith.constant 0 : index
    %3 = vector.load %arg3[%c0_3, %c0_4] : memref<8x128xf32, #tpu.memory_space<vmem>>, vector<8x128xf32>
    %4 = math.tanh %2 : vector<8x128xf32>
    %5 = arith.subf %4, %3 : vector<8x128xf32>
    %c0_5 = arith.constant 0 : index
    %c0_6 = arith.constant 0 : index
    %6 = vector.load %arg5[%c0_5, %c0_6] : memref<1x128xf32, #tpu.memory_space<vmem>>, vector<1x128xf32>
    %7 = vector.broadcast %6 : vector<1x128xf32> to vector<8x128xf32>
    %8 = arith.mulf %5, %7 : vector<8x128xf32>
    %9 = arith.addf %3, %8 : vector<8x128xf32>
    %c0_7 = arith.constant 0 : index
    %c0_8 = arith.constant 0 : index
    %10 = vector.load %arg6[%c0_7, %c0_8] : memref<8x128xf32, #tpu.memory_space<vmem>>, vector<8x128xf32>
    tpu.vector_store %arg6[%c0_7, %c0_8], %9 {strides = array<i32>} : memref<8x128xf32, #tpu.memory_space<vmem>>, vector<8x128xf32>,
    return
  }
  func.func @transform_0(%arg0: i32, %arg1: i32) -> (i32, i32) {
    %c0_i32 = arith.constant 0 : i32
    %c0_i32_0 = arith.constant 0 : i32
    return %arg1, %c0_i32 : i32, i32
  }
  func.func @transform_1(%arg0: i32, %arg1: i32) -> (i32, i32) {
    %c0_i32 = arith.constant 0 : i32
    return %arg1, %arg0 : i32, i32
  }
  func.func @transform_2(%arg0: i32, %arg1: i32) -> (i32, i32) {
    %c0_i32 = arith.constant 0 : i32
    %c0_i32_0 = arith.constant 0 : i32
    return %c0_i32, %arg0 : i32, i32
  }
  func.func @transform_3(%arg0: i32, %arg1: i32) -> (i32, i32) {
    %c0_i32 = arith.constant 0 : i32
    %c0_i32_0 = arith.constant 0 : i32
    return %c0_i32, %arg0 : i32, i32
  }
  func.func @transform_4(%arg0: i32, %arg1: i32) -> (i32, i32) {
    %c0_i32 = arith.constant 0 : i32
    return %arg1, %arg0 : i32, i32
  }
}

</mosaic_0001>

<bundles_post_ra>
// kernel: tpu_custom_call.1
= control target key start
LH: loop header
LB: loop body
LE: loop exit
PB: predicated region body
PF: predicated region fallthrough
CT: control target
= control target key end

     0   :  { %9 = vsyncpa [#allocation3], 0  ;;  %s488_s0 = inlined_call_operand.hbm [shape: bf16[8,256], index: 0, kind: input, shape index: {}]   ;;  %s489_s1 = inlined_call_operand.hbm [shape: f32[8,128], index: 1, kind: input, shape index: {}]   ;;  %s490_s2 = inlined_call_operand.hbm [shape: bf16[256,128], index: 2, kind: input, shape index: {}]   ;;  %s491_s3 = inlined_call_operand.vmem [shape: f32[1,128], index: 3, kind: input, shape index: {}]   ;;  %s492_s4 = inlined_call_operand.hbm [shape: f32[8,128], index: 4, kind: output, shape index: {}]  }
   0x1   :  { %10 = vsyncpa [#allocation6], 0  ;;  %s28_s17 = sshll.u32 %s489_s1, 4  ;;  %s29_s17 = int_to_ptr.hbm [resolvable:$true] %s28_s17 }
   0x2   :  { %11 = vsyncpa [#allocation4], 0  ;;  %s442_s18 = smov [#allocation5]   ;;  %s17_s22 = sshll.u32 %s488_s0, 4  ;;  %s18_s22 = int_to_ptr.hbm [resolvable:$true] %s17_s22 }
   0x3   :  { %s30_s19 = sshll.u32 %s442_s18, 4  ;;  %s443_s23 = smov [#allocation2]   ;;  %s31_s19 = int_to_ptr.vmem [resolvable:$true] %s30_s19 }
   0x4   :  { %33 = dma.hbm_to_vmem [thread:$0]  %s29_s17, 128, %s31_s19, [#allocation6]  }
   0x5   :  { %s19_s24 = sshll.u32 %s443_s23, 4  ;;  %s38_s27 = sshll.u32 %s490_s2, 4  ;;  %s20_s24 = int_to_ptr.vmem [resolvable:$true] %s19_s24  ;;  %s39_s27 = int_to_ptr.hbm [resolvable:$true] %s38_s27 }
   0x6   :  { %22 = dma.hbm_to_vmem [thread:$0]  %s18_s22, 128, %s20_s24, [#allocation3]  }
   0x7   :  { %s444_s1 = smov [#allocation7]   ;;  %s445_s29 = smov 64  }
   0x8   :  { %s40_s28 = sshll.u32 %s444_s1, 4  ;;  %s446_s30 = smov 4   ;;  %s41_s28 = int_to_ptr.vmem [resolvable:$true] %s40_s28 }
   0x9   :  { %46 = dma.hbm_to_vmem [thread:$0]  %s39_s27, 2048, %s41_s28, [#allocation6], %s445_s29, %s445_s29, %s446_s30  }
   0xa   :  { %436 = dma.done.wait [#allocation3], 128  }
   0xb   :  { %437 = vsyncadd [#allocation3], 4294967168 }
   0xc   :  { %438 = dma.done.wait [#allocation6], 2176  }
   0xd   :  { %439 = vsyncadd [#allocation6], 4294965120  ;;  %v322_v0 = vld [vmem:[#allocation7 + $0x38] sm:$0xff]  ;;  %v321_v2 = vld [vmem:[#allocation7 + $0x30] sm:$0xff]  ;;  %s447_s5 = smov [#allocation8]   ;;  %s240_s9 = sshll.u32 %s492_s4, 4  ;;  %s241_s9 = int_to_ptr.hbm [resolvable:$true] %s240_s9 }
   0xe   :  { %v330_v1 = vld [vmem:[#allocation7 + $0x78] sm:$0xff]  ;;  %197 = vmatpush.bf16.msra.mxu0 %v322_v0  ;;  %v329_v3 = vld [vmem:[#allocation7 + $0x70] sm:$0xff]  ;;  %v320_v4 = vld [vmem:[#allocation7 + $0x28] sm:$0xff]  ;;  %s238_s6 = sshll.u32 %s447_s5, 4  ;;  %s239_s6 = int_to_ptr.vmem [resolvable:$true] %s238_s6 }
   0xf   :  { %210 = vmatpush.bf16.msra.mxu1 %v330_v1  ;;  %v328_v5 = vld [vmem:[#allocation7 + $0x68] sm:$0xff]  ;;  %v319_v6 = vld [vmem:[#allocation7 + $0x20] sm:$0xff]  ;;  %v318_v8 = vld [vmem:[#allocation7 + $0x18] sm:$0xff] }
  0x10   :  { %v327_v7 = vld [vmem:[#allocation7 + $0x60] sm:$0xff]  ;;  %v326_v9 = vld [vmem:[#allocation7 + $0x58] sm:$0xff]  ;;  %v317_v10 = vld [vmem:[#allocation7 + $0x10] sm:$0xff] }
  0x11   :  { %v325_v11 = vld [vmem:[#allocation7 + $0x50] sm:$0xff]  ;;  %v316_v12 = vld [vmem:[#allocation7 + $0x8] sm:$0xff]  ;;  %v315_v17 = vld [vmem:[#allocation7] sm:$0xff] }
  0x12   :  { %198 = vmatpush.bf16.msra.mxu0 %v321_v2  ;;  %v324_v13 = vld [vmem:[#allocation7 + $0x48] sm:$0xff]  ;;  %v61_v14 = vld [vmem:[#allocation2] sm:$0xff]  ;;  %v323_v18 = vld [vmem:[#allocation7 + $0x40] sm:$0xff] }
  0x13   :  { %211 = vmatpush.bf16.msra.mxu1 %v329_v3  ;;  %v95_v15 = vunpack.c.l.b16 %v61_v14  ;;  %v96_v16 = vunpack.c.h.b16 %v61_v14  ;;  %v223_v24 = vld [vmem:[#allocation5] sm:$0xff]  ;;  %v337_v27 = vld [vmem:[%s491_s3] ss:$0 sm:$0xff] }
  0x15   :  { %v97_v19 = vpack.c.b16 %v95_v15, %v95_v15  ;;  %v98_v20 = vpack.c.b16 %v96_v16, %v96_v16 }
  0x16   :  { %199 = vmatpush.bf16.msra.mxu0 %v320_v4 }
  0x17   :  { %212 = vmatpush.bf16.msra.mxu1 %v328_v5 }
  0x1a   :  { %200 = vmatpush.bf16.msra.mxu0 %v319_v6 }
  0x1b   :  { %213 = vmatpush.bf16.msra.mxu1 %v327_v7 }
  0x1e   :  { %201 = vmatpush.bf16.msra.mxu0 %v318_v8 }
  0x1f   :  { %214 = vmatpush.bf16.msra.mxu1 %v326_v9 }
  0x22   :  { %202 = vmatpush.bf16.msra.mxu0 %v317_v10 }
  0x23   :  { %215 = vmatpush.bf16.msra.mxu1 %v325_v11 }
  0x26   :  { %203 = vmatpush.bf16.msra.mxu0 %v316_v12 }
  0x27   :  { %216 = vmatpush.bf16.msra.mxu1 %v324_v13 }
  0x2a   :  { %204 = vmatpush.bf16.msra.mxu0 %v315_v17 }
  0x2b   :  { %217 = vmatpush.bf16.msra.mxu1 %v323_v18 }
  0x2d   :  { %205 = vmatmul.bf16.vlgmr.msra.gmra.mxu0 %v97_v19 }
  0x2e   :  { %218 = vmatmul.bf16.vlgmr.msra.gmra.mxu1 %v98_v20 }
  0xaa   :  { %v206_v21 = vpop.f32.mrf.mxu0 }
  0xab   :  { %v219_v22 = vpop.f32.mrf.mxu1 }
  0xac   :  { %v220_v23 = vadd.f32 %v219_v22, %v206_v21 }
  0xae   :  { %338 = vtanh.f32 %v220_v23 }
  0xb2   :  { %v208_v25 = vpop.f32.mrf.mxu0 }
  0xb3   :  { %v221_v26 = vpop.f32.mrf.mxu1 }
  0xb4   :  { %v339_v28 = vpop.eup %338 }
  0xb5   :  { %v225_v29 = vsub.f32 %v339_v28, %v223_v24 }
  0xb7   :  { %v230_v30 = vmul.f32 %v337_v27, %v225_v29 }
  0xb9   :  { %v231_v31 = vadd.f32 %v230_v30, %v223_v24 }
  0xbb   :  { %232 = vst [vmem:[#allocation8] sm:$0xff] %v231_v31 }
  0xbc   :  { %243 = dma.vmem_to_hbm [thread:$0]  %s239_s6, 128, %s241_s9, [#allocation4]  }
  0xbd   :  { %440 = dma.done.wait [#allocation4], 128  }
  0xbe   :  { %441 = vsyncadd [#allocation4], 4294967168 }
  0xbf   :  { %248 = vsyncpa [#allocation3], 1 }
  0xc0   :  { %249 = vsyncpa [#allocation6], 1 }
  0xc1   :  { %250 = vsyncpa [#allocation4], 1 }

</bundles_post_ra>
